<compile_context>
chip_gen: v7x
topology: tpu7x:2x2x1
jax: 0.10.0
libtpu: 0.0.40
codegen_flags: <defaults>
</compile_context>

<pallas_src>
import functools
import math

import jax
import jax.numpy as jnp
from jax.experimental import pallas as pl
from jax.experimental.pallas import tpu as pltpu

VMEM_LIMIT = 36 * 1024 * 1024  # <= 40 MiB so v7x (64 MiB/TC) keeps headroom


# ----------------------------------------------------------------------------
# tiling helper
# ----------------------------------------------------------------------------
def _pick_tile(dim, pref, align):
    """Largest multiple-of-`align` tile <= `pref` that divides `dim`; else the
    full dim (always legal as a BlockSpec dim equal to the array extent)."""
    if dim <= pref or dim % align != 0:
        return dim
    t = (pref // align) * align
    while t >= align:
        if dim % t == 0:
            return t
        t -= align
    return dim


# ----------------------------------------------------------------------------
# Standalone LayerNorm kernel (f32 stats, bf16 output for downstream MXU)
# ----------------------------------------------------------------------------
def _layernorm_kernel(x_ref, g_ref, b_ref, o_ref, *, eps):
    x = x_ref[...].astype(jnp.float32)
    mean = jnp.mean(x, axis=-1, keepdims=True)
    xc = x - mean
    var = jnp.mean(xc * xc, axis=-1, keepdims=True)
    y = xc * jax.lax.rsqrt(var + eps) * g_ref[...] + b_ref[...]
    o_ref[...] = y.astype(o_ref.dtype)


def layernorm(x2d, gamma, beta, *, eps=1e-5, out_dtype=jnp.bfloat16, tm_pref=512):
    M, D = x2d.shape
    tm = _pick_tile(M, tm_pref, 8)
    return pl.pallas_call(
        functools.partial(_layernorm_kernel, eps=eps),
        out_shape=jax.ShapeDtypeStruct((M, D), out_dtype),
        grid=(M // tm,),
        in_specs=[
            pl.BlockSpec((tm, D), lambda i: (i, 0)),
            pl.BlockSpec((1, D), lambda i: (0, 0)),
            pl.BlockSpec((1, D), lambda i: (0, 0)),
        ],
        out_specs=pl.BlockSpec((tm, D), lambda i: (i, 0)),
        compiler_params=pltpu.CompilerParams(
            dimension_semantics=("parallel",),
            vmem_limit_bytes=VMEM_LIMIT,
        ),
    )(
        x2d,
        gamma.reshape(1, D).astype(jnp.float32),
        beta.reshape(1, D).astype(jnp.float32),
    )


# ----------------------------------------------------------------------------
# Tiled matmul + bias + optional LIF epilogue
# ----------------------------------------------------------------------------
def _lif(y, t_max, threshold):
    # Closed form of the rate-coded LIF loop (constant drive per step, soft
    # reset): spike_count = clip(floor(t_max*y/th), 0, t_max);
    # output = spike_count * th / t_max (analog rate surrogate).
    spikes = jnp.clip(jnp.floor(y * (float(t_max) / threshold)), 0.0, float(t_max))
    return spikes * (threshold / float(t_max))


def _linear_kernel_1k(x_ref, w_ref, b_ref, o_ref, *, act, t_max, threshold):
    # Single-K-tile path: no VMEM accumulator round-trip.
    y = jnp.dot(
        x_ref[...].astype(jnp.bfloat16), w_ref[...],
        preferred_element_type=jnp.float32,
    ) + b_ref[...]
    if act == "lif":
        y = _lif(y, t_max, threshold)
    o_ref[...] = y.astype(o_ref.dtype)


def _linear_kernel_acc(x_ref, w_ref, b_ref, o_ref, acc_ref, *, act, t_max, threshold):
    k = pl.program_id(2)

    @pl.when(k == 0)
    def _():
        acc_ref[...] = jnp.zeros_like(acc_ref)

    acc_ref[...] += jnp.dot(
        x_ref[...].astype(jnp.bfloat16), w_ref[...],
        preferred_element_type=jnp.float32,
    )

    @pl.when(k == pl.num_programs(2) - 1)
    def _():
        y = acc_ref[...] + b_ref[...]
        if act == "lif":
            y = _lif(y, t_max, threshold)
        o_ref[...] = y.astype(o_ref.dtype)


def fused_linear(
    x2d,
    w,
    b,
    *,
    activation=None,
    t_max=1,
    threshold=1.0,
    out_dtype=jnp.float32,
    tm_pref=512,
    tn_pref=512,
    tk_pref=512,
):
    """[M,K] @ [K,N] + [N] with optional fused LIF epilogue.  Weights are
    expected bf16 (stored once at init); x may be bf16 or f32."""
    M, K = x2d.shape
    N = w.shape[1]
    if w.dtype != jnp.bfloat16:  # no-op for properly prepared params
        w = w.astype(jnp.bfloat16)
    b2d = b.reshape(1, N).astype(jnp.float32)

    tm = _pick_tile(M, tm_pref, 8)
    tn = _pick_tile(N, tn_pref, 128)
    tk = _pick_tile(K, tk_pref, 128)
    gm, gn, gk = M // tm, N // tn, K // tk

    cost = pl.CostEstimate(
        flops=2 * M * N * K,
        transcendentals=0,
        bytes_accessed=M * K * x2d.dtype.itemsize
        + K * N * 2
        + M * N * jnp.dtype(out_dtype).itemsize,
    )

    if gk == 1:
        kernel = functools.partial(
            _linear_kernel_1k, act=activation, t_max=t_max, threshold=threshold
        )
        return pl.pallas_call(
            kernel,
            out_shape=jax.ShapeDtypeStruct((M, N), out_dtype),
            grid=(gm, gn),
            in_specs=[
                pl.BlockSpec((tm, K), lambda i, j: (i, 0)),
                pl.BlockSpec((K, tn), lambda i, j: (0, j)),
                pl.BlockSpec((1, tn), lambda i, j: (0, j)),
            ],
            out_specs=pl.BlockSpec((tm, tn), lambda i, j: (i, j)),
            compiler_params=pltpu.CompilerParams(
                dimension_semantics=("parallel", "parallel"),
                vmem_limit_bytes=VMEM_LIMIT,
            ),
            cost_estimate=cost,
        )(x2d, w, b2d)

    kernel = functools.partial(
        _linear_kernel_acc, act=activation, t_max=t_max, threshold=threshold
    )
    return pl.pallas_call(
        kernel,
        out_shape=jax.ShapeDtypeStruct((M, N), out_dtype),
        grid=(gm, gn, gk),
        in_specs=[
            pl.BlockSpec((tm, tk), lambda i, j, k: (i, k)),
            pl.BlockSpec((tk, tn), lambda i, j, k: (k, j)),
            pl.BlockSpec((1, tn), lambda i, j, k: (0, j)),
        ],
        out_specs=pl.BlockSpec((tm, tn), lambda i, j, k: (i, j)),
        scratch_shapes=[pltpu.VMEM((tm, tn), jnp.float32)],
        compiler_params=pltpu.CompilerParams(
            dimension_semantics=("parallel", "parallel", "arbitrary"),
            vmem_limit_bytes=VMEM_LIMIT,
        ),
        cost_estimate=cost,
    )(x2d, w, b2d)


# ----------------------------------------------------------------------------
# Multi-head attention on head-major packed QKV; grid = (B, H).
# ----------------------------------------------------------------------------
def _attention_kernel(qkv_ref, o_ref):
    # qkv_ref block: (1, S, 1, 3, Dh) bf16; the 1/sqrt(Dh) scale is already
    # folded into the Q projection weights.
    q = qkv_ref[0, :, 0, 0, :]  # (S, Dh)
    k = qkv_ref[0, :, 0, 1, :]
    v = qkv_ref[0, :, 0, 2, :]
    s = jax.lax.dot_general(
        q, k, (((1,), (1,)), ((), ())), preferred_element_type=jnp.float32
    )
    s = s - jnp.max(s, axis=-1, keepdims=True)
    p = jnp.exp(s)
    p = p * pl.reciprocal(jnp.sum(p, axis=-1, keepdims=True), approx=True)
    o = jnp.dot(p.astype(jnp.bfloat16), v, preferred_element_type=jnp.float32)
    o_ref[0, 0] = o.astype(o_ref.dtype)


def multihead_attention(qkv, num_heads):
    """qkv: [B, S, 3D] bf16, head-major packed [h0(q|k|v) | h1(q|k|v) | ...].
    Returns [B, H, S, Dh] bf16."""
    # TODO(synk): flash-tile over (q_tile, kv_tile) with online-softmax scratch
    # once S exceeds a few hundred; full SxS scores per head are fine here.
    B, S, D3 = qkv.shape
    D = D3 // 3
    Dh = D // num_heads
    qkv5 = qkv.reshape(B, S, num_heads, 3, Dh)  # free reshape (head-major pack)
    return pl.pallas_call(
        _attention_kernel,
        out_shape=jax.ShapeDtypeStruct((B, num_heads, S, Dh), jnp.bfloat16),
        grid=(B, num_heads),
        in_specs=[pl.BlockSpec((1, S, 1, 3, Dh), lambda b, h: (b, 0, h, 0, 0))],
        out_specs=pl.BlockSpec((1, 1, S, Dh), lambda b, h: (b, h, 0, 0)),
        compiler_params=pltpu.CompilerParams(
            dimension_semantics=("parallel", "parallel"),
            vmem_limit_bytes=VMEM_LIMIT,
        ),
    )(qkv5)


# ----------------------------------------------------------------------------
# Model (parameter setup and glue in plain JAX)
# ----------------------------------------------------------------------------
def init_params(key, vocab_size, embedding_dim, num_heads, num_layers):
    D = embedding_dim
    Dff = 4 * D
    Dh = D // num_heads
    scale = 1.0 / math.sqrt(Dh)
    keys = jax.random.split(key, 3 + num_layers)

    def dense(k, fan_in, fan_out):
        kw, kb = jax.random.split(k)
        lim = 1.0 / math.sqrt(fan_in)
        w = jax.random.uniform(kw, (fan_in, fan_out), jnp.float32, -lim, lim)
        b = jax.random.uniform(kb, (fan_out,), jnp.float32, -lim, lim)
        return w, b

    params = {
        "embedding": jax.random.normal(keys[0], (vocab_size, D), jnp.float32),
        "pos_encoding": jax.random.normal(keys[1], (1000, D), jnp.float32),
        "layers": [],
    }
    for li in range(num_layers):
        lk = jax.random.split(keys[3 + li], 6)
        wq, bq = dense(lk[0], D, D)
        wk, bk = dense(lk[1], D, D)
        wv, bv = dense(lk[2], D, D)
        wo, bo = dense(lk[3], D, D)
        w1, b1 = dense(lk[4], D, Dff)
        w2, b2 = dense(lk[5], Dff, D)

        # Fold the softmax 1/sqrt(Dh) scale into the Q projection once.
        wq = wq * scale
        bq = bq * scale

        # Head-major QKV packing: [h0(q|k|v) | h1(q|k|v) | ...] so attention
        # can DMA one head's (S, 3, Dh) slab per grid step.
        w_qkv = jnp.stack(
            [wq.reshape(D, num_heads, Dh),
             wk.reshape(D, num_heads, Dh),
             wv.reshape(D, num_heads, Dh)],
            axis=2,
        ).reshape(D, 3 * D)
        b_qkv = jnp.stack(
            [bq.reshape(num_heads, Dh),
             bk.reshape(num_heads, Dh),
             bv.reshape(num_heads, Dh)],
            axis=1,
        ).reshape(3 * D)

        params["layers"].append(
            {
                # weights stored bf16 once — no per-forward-call cast/HBM pass
                "w_qkv": w_qkv.astype(jnp.bfloat16),
                "b_qkv": b_qkv,
                "wo": wo.astype(jnp.bfloat16), "bo": bo,
                "w1": w1.astype(jnp.bfloat16), "b1": b1,
                "w2": w2.astype(jnp.bfloat16), "b2": b2,
                "ln1_g": jnp.ones((D,), jnp.float32),
                "ln1_b": jnp.zeros((D,), jnp.float32),
                "ln2_g": jnp.ones((D,), jnp.float32),
                "ln2_b": jnp.zeros((D,), jnp.float32),
            }
        )
    wout, bout = dense(keys[2], D, vocab_size)
    params["out_w"] = wout.astype(jnp.bfloat16)
    params["out_b"] = bout
    return params


def spiking_block_forward(p, x, num_heads, t_max, lambda_reg, threshold=1.0,
                          mask=None):
    # TODO(synk): attention mask handling and the adaptive time-step schedule
    # of the reference SpikingTransformerBlock are not specified; only
    # mask=None and a fixed-t_max rate-coded LIF are implemented.
    B, S, D = x.shape
    x2 = x.reshape(B * S, D)  # residual stream stays f32

    # --- spiking multi-head self-attention ------------------------------------
    x_ln1 = layernorm(x2, p["ln1_g"], p["ln1_b"])                      # bf16
    qkv = fused_linear(x_ln1, p["w_qkv"], p["b_qkv"],
                       out_dtype=jnp.bfloat16)                         # [M,3D] bf16
    attn = multihead_attention(qkv.reshape(B, S, 3 * D), num_heads)    # [B,H,S,Dh]
    attn2d = attn.transpose(0, 2, 1, 3).reshape(B * S, D)              # bf16
    attn_spk = fused_linear(
        attn2d, p["wo"], p["bo"],
        activation="lif", t_max=t_max, threshold=threshold,
        out_dtype=jnp.float32,
    )
    # output = count * threshold / t_max  =>  rate = mean(output)/threshold
    rate_attn = jnp.mean(attn_spk) / threshold
    x2 = x2 + attn_spk

    # --- spiking feed-forward ---------------------------------------------------
    x_ln2 = layernorm(x2, p["ln2_g"], p["ln2_b"])                      # bf16
    ff_spk = fused_linear(
        x_ln2, p["w1"], p["b1"],
        activation="lif", t_max=t_max, threshold=threshold,
        out_dtype=jnp.bfloat16,
    )
    rate_ffn = jnp.mean(ff_spk, dtype=jnp.float32) / threshold
    ff_out = fused_linear(ff_spk, p["w2"], p["b2"], out_dtype=jnp.float32)
    x2 = x2 + ff_out

    metrics = {
        "spike_rate_attn": rate_attn,
        "spike_rate_ffn": rate_ffn,
        "avg_timesteps": jnp.float32(t_max),
        "spike_reg_loss": lambda_reg * (rate_attn + rate_ffn),
    }
    return x2.reshape(B, S, D), metrics


def adaptive_spiking_transformer_forward(
    params, tokens, *, num_heads, t_max, lambda_reg, mask=None
):
    B, S = tokens.shape
    D = params["embedding"].shape[1]
    vocab = params["out_w"].shape[1]

    # embedding gather + learned positional encoding (glue in plain JAX)
    x = params["embedding"][tokens] + params["pos_encoding"][:S][None, :, :]

    all_metrics = []
    for lp in params["layers"]:
        x, m = spiking_block_forward(lp, x, num_heads, t_max, lambda_reg,
                                     mask=mask)
        all_metrics.append(m)

    logits = fused_linear(x.reshape(B * S, D), params["out_w"], params["out_b"],
                          out_dtype=jnp.float32)
    logits = logits.reshape(B, S, vocab)
    return logits, all_metrics


# ----------------------------------------------------------------------------
if __name__ == "__main__":
    vocab_size = 50
    embedding_dim = 32
    num_heads = 4
    num_layers = 2
    T_max = 4
    lambda_reg = 0.001
    batch, seq = 2, 8

    key = jax.random.PRNGKey(0)
    pkey, tkey = jax.random.split(key)
    params = init_params(pkey, vocab_size, embedding_dim, num_heads, num_layers)
    tokens = jax.random.randint(tkey, (batch, seq), 0, vocab_size, dtype=jnp.int32)

    logits, metrics = adaptive_spiking_transformer_forward(
        params, tokens, num_heads=num_heads, t_max=T_max, lambda_reg=lambda_reg
    )
    logits = jax.block_until_ready(logits)
    for m in metrics:
        jax.block_until_ready(m["spike_rate_attn"])
        jax.block_until_ready(m["spike_reg_loss"])

    assert logits.shape == (batch, seq, vocab_size)
    assert logits.dtype == jnp.float32
    assert len(metrics) == num_layers
    print("KERNEL_OK")
</pallas_src>

<mosaic_0001>
module attributes {stable_mosaic.version = 11 : i64} {
  func.func @_layernorm_kernel(%arg0: i32, %arg1: memref<16x32xf32, #tpu.memory_space<vmem>>, %arg2: memref<1x32xf32, #tpu.memory_space<vmem>>, %arg3: memref<1x32xf32, #tpu.memory_space<vmem>>, %arg4: memref<16x32xbf16, #tpu.memory_space<vmem>>) attributes {dimension_semantics = [#tpu.dimension_semantics<parallel>], iteration_bounds = array<i64: 1>, scalar_prefetch = 0 : i64, scratch_operands = 0 : i64, tpu.core_type = #tpu.core_type<tc>, window_params = [{transform_indices = @transform_0, window_bounds = array<i64: 16, 32>}, {pipeline_mode = #tpu.pipeline_mode<synchronous>, transform_indices = @transform_1, window_bounds = array<i64: 1, 32>}, {pipeline_mode = #tpu.pipeline_mode<synchronous>, transform_indices = @transform_2, window_bounds = array<i64: 1, 32>}, {transform_indices = @transform_3, window_bounds = array<i64: 16, 32>}]} {
    %c0 = arith.constant 0 : index
    %c0_0 = arith.constant 0 : index
    %0 = vector.load %arg1[%c0, %c0_0] : memref<16x32xf32, #tpu.memory_space<vmem>>, vector<16x32xf32>
    %cst = arith.constant dense<0.000000e+00> : vector<16xf32>
    %1 = vector.multi_reduction <add>, %0, %cst [1] : vector<16x32xf32> to vector<16xf32>
    %2 = vector.shape_cast %1 : vector<16xf32> to vector<16x1xf32>
    %cst_1 = arith.constant 3.200000e+01 : f32
    %3 = vector.broadcast %cst_1 : f32 to vector<16x1xf32>
    %4 = arith.divf %2, %3 : vector<16x1xf32>
    %5 = vector.broadcast %4 : vector<16x1xf32> to vector<16x32xf32>
    %6 = arith.subf %0, %5 : vector<16x32xf32>
    %7 = arith.mulf %6, %6 : vector<16x32xf32>
    %cst_2 = arith.constant dense<0.000000e+00> : vector<16xf32>
    %8 = vector.multi_reduction <add>, %7, %cst_2 [1] : vector<16x32xf32> to vector<16xf32>
    %9 = vector.shape_cast %8 : vector<16xf32> to vector<16x1xf32>
    %cst_3 = arith.constant 3.200000e+01 : f32
    %10 = vector.broadcast %cst_3 : f32 to vector<16x1xf32>
    %11 = arith.divf %9, %10 : vector<16x1xf32>
    %cst_4 = arith.constant 9.99999974E-6 : f32
    %12 = vector.broadcast %cst_4 : f32 to vector<16x1xf32>
    %13 = arith.addf %11, %12 : vector<16x1xf32>
    %14 = math.rsqrt %13 : vector<16x1xf32>
    %15 = vector.broadcast %14 : vector<16x1xf32> to vector<16x32xf32>
    %16 = arith.mulf %6, %15 : vector<16x32xf32>
    %c0_5 = arith.constant 0 : index
    %c0_6 = arith.constant 0 : index
    %17 = vector.load %arg2[%c0_5, %c0_6] : memref<1x32xf32, #tpu.memory_space<vmem>>, vector<1x32xf32>
    %18 = vector.broadcast %17 : vector<1x32xf32> to vector<16x32xf32>
    %19 = arith.mulf %16, %18 : vector<16x32xf32>
    %c0_7 = arith.constant 0 : index
    %c0_8 = arith.constant 0 : index
    %20 = vector.load %arg3[%c0_7, %c0_8] : memref<1x32xf32, #tpu.memory_space<vmem>>, vector<1x32xf32>
    %21 = vector.broadcast %20 : vector<1x32xf32> to vector<16x32xf32>
    %22 = arith.addf %19, %21 : vector<16x32xf32>
    %23 = arith.truncf %22 : vector<16x32xf32> to vector<16x32xbf16>
    %c0_9 = arith.constant 0 : index
    %c0_10 = arith.constant 0 : index
    %24 = vector.load %arg4[%c0_9, %c0_10] : memref<16x32xbf16, #tpu.memory_space<vmem>>, vector<16x32xbf16>
    tpu.vector_store %arg4[%c0_9, %c0_10], %23 {strides = array<i32>} : memref<16x32xbf16, #tpu.memory_space<vmem>>, vector<16x32xbf16>,
    return
  }
  func.func @transform_0(%arg0: i32) -> (i32, i32) {
    %c0_i32 = arith.constant 0 : i32
    %c0_i32_0 = arith.constant 0 : i32
    return %arg0, %c0_i32 : i32, i32
  }
  func.func @transform_1(%arg0: i32) -> (i32, i32) {
    %c0_i32 = arith.constant 0 : i32
    %c0_i32_0 = arith.constant 0 : i32
    %c0_i32_1 = arith.constant 0 : i32
    return %c0_i32, %c0_i32_0 : i32, i32
  }
  func.func @transform_2(%arg0: i32) -> (i32, i32) {
    %c0_i32 = arith.constant 0 : i32
    %c0_i32_0 = arith.constant 0 : i32
    %c0_i32_1 = arith.constant 0 : i32
    return %c0_i32, %c0_i32_0 : i32, i32
  }
  func.func @transform_3(%arg0: i32) -> (i32, i32) {
    %c0_i32 = arith.constant 0 : i32
    %c0_i32_0 = arith.constant 0 : i32
    return %arg0, %c0_i32 : i32, i32
  }
}

</mosaic_0001>

<bundles_post_ra>
// kernel: tpu_custom_call.1
= control target key start
LH: loop header
LB: loop body
LE: loop exit
PB: predicated region body
PF: predicated region fallthrough
CT: control target
= control target key end

     0   :  { %8 = vsyncpa [#allocation3], 0  ;;  %s229_s0 = inlined_call_operand.hbm [shape: f32[16,32], index: 0, kind: input, shape index: {}]   ;;  %s230_s1 = inlined_call_operand.vmem [shape: f32[1,32], index: 1, kind: input, shape index: {}]   ;;  %s231_s2 = inlined_call_operand.vmem [shape: f32[1,32], index: 2, kind: input, shape index: {}]   ;;  %s232_s3 = inlined_call_operand.hbm [shape: bf16[16,32], index: 3, kind: output, shape index: {}]  }
   0x1   :  { %9 = vsyncpa [#allocation4], 0  ;;  %s169_s12 = smov [#allocation2]   ;;  %s121_s16 = scalar_lea.hbm %s229_s0, 256 }
   0x2   :  { %s15_s13 = sshll.u32 %s169_s12, 4  ;;  %p122_p0 = scmp.ne.s32.totalorder %s229_s0, %s121_s16  ;;  %s16_s13 = int_to_ptr.vmem [resolvable:$true] %s15_s13 }
   0x3   :  { %p125_p1 = scmp.lt.u32.totalorder %s121_s16, %s229_s0 }
   0x5   :  { %p127_p2 = pnand %p125_p1, %p122_p0 }
   0x7   :  { %130 = shalt.err (!%p127_p2)
}
   0x8   :  { %s131_s21 = scalar_lea.vmem %s16_s13, 256  ;;  %p136_p4 = scmp.lt.s32.totalorder %s16_s13, %s16_s13 }
   0x9   :  { %p132_p3 = scmp.ne.s32.totalorder %s16_s13, %s131_s21  ;;  %p137_p5 = scmp.lt.s32.totalorder %s131_s21, %s131_s21 }
   0xb   :  { %p138_p6 = por %p137_p5, %p136_p4 }
   0xd   :  { %p139_p7 = pnand %p138_p6, %p132_p3 }
   0xf   :  { %142 = shalt.err (!%p139_p7)
}
  0x10   :  { %s170_s22 = smov 128   ;;  %s171_s23 = smov 8  }
  0x11   :  { %21 = dma.hbm_to_vmem [thread:$0]  %s229_s0, 256, %s16_s13, [#allocation3], %s170_s22, %s170_s22, %s171_s23  }
  0x12   :  { %165 = dma.done.wait [#allocation3], 256  }
  0x13   :  { %166 = vsyncadd [#allocation3], 4294967040  ;;  %vm31_vm0 = vcmask 261120   ;;  %v29_v0 = vld [vmem:[#allocation2] sm:$0xff]  ;;  %v30_v1 = vld [vmem:[#allocation2 + $0x8] sm:$0xff]  ;;  %vm85_vm1 = vcmask 257024  }
  0x14   :  { %v32_v2 = vsel %vm31_vm0, %v29_v0, 0.0  ;;  %v35_v3 = vsel %vm31_vm0, %v30_v1, 0.0  ;;  %v105_v21 = vld [vmem:[%s230_s1] ss:$0 sm:$0xff]  ;;  %s172_s29 = smov [#allocation5]  }
  0x15   :  { %33 = vadd.xlane.f32.xlu0 %v32_v2  ;;  %v106_v23 = vld [vmem:[%s231_s2] ss:$0 sm:$0xff]  ;;  %s93_s30 = sshll.u32 %s172_s29, 4  ;;  %s94_s30 = int_to_ptr.vmem [resolvable:$true] %s93_s30 }
  0x16   :  { %s143_s1 = scalar_lea.vmem %s94_s30, 128  ;;  %p148_p9 = scmp.lt.s32.totalorder %s94_s30, %s94_s30 }
  0x17   :  { %p144_p8 = scmp.ne.s32.totalorder %s94_s30, %s143_s1  ;;  %p149_p10 = scmp.lt.s32.totalorder %s143_s1, %s143_s1 }
  0x19   :  { %36 = vadd.xlane.f32.xlu0 %v35_v3  ;;  %p150_p11 = por %p149_p10, %p148_p9 }
  0x1b   :  { %p151_p12 = pnand %p150_p11, %p144_p8 }
  0xa2   :  { %v34_v4 = vpop.xlane.xlu0 %33 }
  0xa3   :  { %v39_v5 = vmul.f32 0.03125, %v34_v4 }
  0xa5   :  { %v41_v6 = vsub.f32 %v29_v0, %v39_v5 }
  0xa6   :  { %v37_v7 = vpop.xlane.xlu0 %36 }
  0xa7   :  { %v40_v8 = vmul.f32 0.03125, %v37_v7  ;;  %v43_v9 = vmul.f32 %v41_v6, %v41_v6 }
  0xa9   :  { %v42_v10 = vsub.f32 %v30_v1, %v40_v8  ;;  %v45_v11 = vsel %vm31_vm0, %v43_v9, 0.0 }
  0xaa   :  { %46 = vadd.xlane.f32.xlu1 %v45_v11 }
  0xab   :  { %v44_v12 = vmul.f32 %v42_v10, %v42_v10 }
  0xad   :  { %v48_v13 = vsel %vm31_vm0, %v44_v12, 0.0 }
  0xae   :  { %49 = vadd.xlane.f32.xlu1 %v48_v13 }
 0x137   :  { %v47_v14 = vpop.xlane.xlu1 %46 }
 0x138   :  { %v51_v15 = vmul.f32 0.03125, %v47_v14 }
 0x13a   :  { %v53_v16 = vadd.f32 1e-05, %v51_v15 }
 0x13b   :  { %v50_v17 = vpop.xlane.xlu1 %49 }
 0x13c   :  { %117 = vrsqrt.f32 %v53_v16  ;;  %v52_v18 = vmul.f32 0.03125, %v50_v17 }
 0x13e   :  { %v54_v19 = vadd.f32 1e-05, %v52_v18 }
 0x140   :  { %119 = vrsqrt.f32 %v54_v19 }
 0x146   :  { %v118_v20 = vpop.eup %117 }
 0x147   :  { %v57_v22 = vmul.f32 %v118_v20, %v41_v6 }
 0x149   :  { %v66_v24 = vmul.f32 %v105_v21, %v57_v22 }
 0x14a   :  { %v120_v25 = vpop.eup %119 }
 0x14b   :  { %v58_v26 = vmul.f32 %v120_v25, %v42_v10  ;;  %v75_v27 = vadd.f32 %v106_v23, %v66_v24 }
 0x14d   :  { %v67_v28 = vmul.f32 %v105_v21, %v58_v26  ;;  %v109_v29 = vpack.c.bf16 %v75_v27, %v75_v27 }
 0x14f   :  { %v76_v30 = vadd.f32 %v106_v23, %v67_v28  ;;  %86 = vst.msk [vmem:[#allocation5] sm:$0xf] %vm85_vm1, %v109_v29 }
 0x151   :  { %v110_v31 = vpack.c.bf16 %v76_v30, %v76_v30 }
 0x153   :  { %87 = vst.msk [vmem:[#allocation5 + $0x4] sm:$0xf] %vm85_vm1, %v110_v31 }
 0x154   :  { %154 = shalt.err (!%p151_p12)
}
 0x155   :  { %s155_s5 = scalar_lea.hbm %s232_s3, 128 }
 0x156   :  { %p156_p13 = scmp.ne.s32.totalorder %s232_s3, %s155_s5  ;;  %p159_p0 = scmp.lt.u32.totalorder %s155_s5, %s232_s3 }
 0x158   :  { %p161_p1 = pnand %p159_p0, %p156_p13 }
 0x15a   :  { %164 = shalt.err (!%p161_p1)
}
 0x15b   :  { %s173_s10 = smov 64   ;;  %s174_s11 = smov 4  }
 0x15c   :  { %99 = dma.vmem_to_hbm [thread:$0]  %s94_s30, 128, %s232_s3, [#allocation4], %s173_s10, %s173_s10, %s174_s11  }
 0x15d   :  { %167 = dma.done.wait [#allocation4], 128  }
 0x15e   :  { %168 = vsyncadd [#allocation4], 4294967168 }
 0x15f   :  { %103 = vsyncpa [#allocation3], 1 }
 0x160   :  { %104 = vsyncpa [#allocation4], 1 }

</bundles_post_ra>
